<compile_context>
chip_gen: v7x
topology: tpu7x:2x2x1
jax: 0.10.0
libtpu: 0.0.40
codegen_flags: <defaults>
</compile_context>

<pallas_src>
import functools
import math

import jax
import jax.numpy as jnp
import numpy as np
from jax.experimental import pallas as pl
from jax.experimental.pallas import tpu as pltpu


def attention_pool_kernel(x_ref, pos0_ref, posr_ref, wq_ref, bq_ref,
                          wkv_ref, bkv_ref, sel_ref, selT_ref,
                          wo_ref, bo_ref, wc_ref, bc_ref,
                          out_ref, att_ref, tok_ref, *, seq, head_dim):
    # x_ref:    (Bt, S, E)    block of Bt images' spatial tokens
    # pos0_ref: (1, E)        positional embedding of the mean token
    # posr_ref: (S, E)        positional embedding of the spatial tokens
    # wq_ref:   (E, E)   bq_ref:  (1, E)      pre-transposed q projection
    # wkv_ref:  (E, 2E)  bkv_ref: (1, 2E)     pre-transposed fused [k | v] projection
    # sel_ref:  (E, nh)  selT_ref:(nh, E)     block-diagonal 0/1 head-selector matrices
    # wo_ref:   (E, E)   bo_ref:  (1, E)      pre-transposed MHA out_proj
    # wc_ref:   (E, out) bc_ref:  (1, out)    pre-transposed c_proj
    # out_ref:  (Bt, 1, out)
    # att_ref:  (Bt, Sp, nh)  attention weights (seq-padded, natural layout)
    # tok_ref:  (Bt, Sp, E)   VMEM scratch: [mean; x] + pos, zero-padded to Sp rows
    Bt, S, E = x_ref.shape
    Sp = tok_ref.shape[1]
    nh = sel_ref.shape[1]
    T = seq + 1                                   # tokens per image (mean + S spatial)
    scale = 1.0 / math.sqrt(head_dim)

    x = x_ref[...]                                            # (Bt, S, E)

    # mean token (query input); assemble tokens in an aligned VMEM scratch (no concat).
    mean_tok = jnp.sum(x, axis=1) * (1.0 / S)                 # (Bt, E)
    q_in = mean_tok + pos0_ref[...]                           # (Bt, E)
    tok_ref[:, 0:1, :] = q_in[:, None, :]
    tok_ref[:, 1:T, :] = x + posr_ref[...][None, :, :]
    if Sp > T:                                                # zero the padded rows
        tok_ref[:, T:Sp, :] = jnp.zeros((Bt, Sp - T, E), jnp.float32)

    # fused K|V projection: one wide MXU matmul over all Bt*Sp token rows.
    tok2d = tok_ref[...].reshape(Bt * Sp, E)
    kv = jnp.dot(tok2d, wkv_ref[...],
                 preferred_element_type=jnp.float32) + bkv_ref[...]   # (Bt*Sp, 2E)
    k2d = kv[:, :E]                                           # (Bt*Sp, E)
    v2d = kv[:, E:]                                           # (Bt*Sp, E)

    # Q projection only on the Bt mean-token rows.
    q = jnp.dot(q_in, wq_ref[...],
                preferred_element_type=jnp.float32) + bq_ref[...]     # (Bt, E)
    qs = q * scale

    # per-head scores via head-selector matmul (no per-head loops, no tiny dots).
    qb2d = jnp.broadcast_to(qs[:, None, :], (Bt, Sp, E)).reshape(Bt * Sp, E)
    scores = jnp.dot(qb2d * k2d, sel_ref[...],
                     preferred_element_type=jnp.float32).reshape(Bt, Sp, nh)
    if Sp > T:                                                # mask padded key rows
        sidx = jax.lax.broadcasted_iota(jnp.int32, (Bt, Sp, nh), 1)
        scores = jnp.where(sidx < T, scores, jnp.float32(-1e30))

    # softmax over keys (sublane axis); padded rows get exactly zero weight.
    m = jnp.max(scores, axis=1, keepdims=True)                # (Bt, 1, nh)
    e = jnp.exp(scores - m)
    denom = jnp.sum(e, axis=1, keepdims=True)
    attn = e / denom                                          # (Bt, Sp, nh)
    att_ref[...] = attn

    # context: expand per-head weights back to E lanes, weight V, reduce over keys.
    attn_exp = jnp.dot(attn.reshape(Bt * Sp, nh), selT_ref[...],
                       preferred_element_type=jnp.float32)    # (Bt*Sp, E)
    ctx = jnp.sum((attn_exp * v2d).reshape(Bt, Sp, E), axis=1)  # (Bt, E)

    o = jnp.dot(ctx, wo_ref[...],
                preferred_element_type=jnp.float32) + bo_ref[...]     # (Bt, E)
    pooled = jnp.dot(o, wc_ref[...],
                     preferred_element_type=jnp.float32) + bc_ref[...]  # (Bt, out)
    out_ref[...] = pooled[:, None, :]


def attention_pool2d(x_nchw, params, num_heads, block_batch=None):
    """Pallas wrapper. x_nchw: (N, C, H, W) f32. Returns (pooled (N, out_dim), att (N, nh, S+1))."""
    N, C, H, W = x_nchw.shape
    S = H * W
    E = C
    head_dim = E // num_heads
    out_dim = params["wc"].shape[0]
    T = S + 1
    Sp = ((T + 7) // 8) * 8                        # tokens padded to a sublane multiple

    if block_batch is None:
        # aim for ~256 MXU rows per grid step, keep per-step VMEM footprint modest,
        # and require Bt | N so the grid tiles the batch exactly.
        target = max(1, 256 // Sp)
        vmem_cap = max(1, (24 << 20) // (7 * Sp * E * 4))
        limit = max(1, min(target, vmem_cap))
        block_batch = max(d for d in range(1, N + 1) if N % d == 0 and d <= limit)
    Bt = block_batch

    # glue: NCHW -> (N, S, E)
    x_nse = jnp.transpose(x_nchw.reshape(N, C, S), (0, 2, 1)).astype(jnp.float32)

    # pre-transposed / fused weights (done once in HBM by XLA, not per grid step)
    pos0 = params["pos"][0:1, :].astype(jnp.float32)                      # (1, E)
    posr = params["pos"][1:, :].astype(jnp.float32)                       # (S, E)
    wq_t = params["wq"].T.astype(jnp.float32)                             # (E, E)
    bq = params["bq"].reshape(1, E).astype(jnp.float32)
    wkv_t = jnp.concatenate([params["wk"].T, params["wv"].T], axis=1).astype(jnp.float32)  # (E, 2E)
    bkv = jnp.concatenate([params["bk"], params["bv"]]).reshape(1, 2 * E).astype(jnp.float32)
    wo_t = params["wo"].T.astype(jnp.float32)                             # (E, E)
    bo = params["bo"].reshape(1, E).astype(jnp.float32)
    wc_t = params["wc"].T.astype(jnp.float32)                             # (E, out_dim)
    bc = params["bc"].reshape(1, out_dim).astype(jnp.float32)
    head_of = jnp.arange(E, dtype=jnp.int32) // head_dim
    sel = (head_of[:, None] == jnp.arange(num_heads, dtype=jnp.int32)[None, :]
           ).astype(jnp.float32)                                          # (E, nh)
    sel_t = sel.T                                                         # (nh, E)

    def const_spec(shape):
        return pl.BlockSpec(shape, lambda b, _n=len(shape): (0,) * _n)

    kernel = functools.partial(attention_pool_kernel, seq=S, head_dim=head_dim)

    pooled, att_raw = pl.pallas_call(
        kernel,
        grid=(N // Bt,),
        in_specs=[
            pl.BlockSpec((Bt, S, E), lambda b: (b, 0, 0)),                # x
            const_spec((1, E)), const_spec((S, E)),                       # pos0, pos_rest
            const_spec((E, E)), const_spec((1, E)),                       # wq_t, bq
            const_spec((E, 2 * E)), const_spec((1, 2 * E)),               # wkv_t, bkv
            const_spec((E, num_heads)), const_spec((num_heads, E)),       # sel, sel_t
            const_spec((E, E)), const_spec((1, E)),                       # wo_t, bo
            const_spec((E, out_dim)), const_spec((1, out_dim)),           # wc_t, bc
        ],
        out_specs=[
            pl.BlockSpec((Bt, 1, out_dim), lambda b: (b, 0, 0)),
            pl.BlockSpec((Bt, Sp, num_heads), lambda b: (b, 0, 0)),
        ],
        out_shape=[
            jax.ShapeDtypeStruct((N, 1, out_dim), jnp.float32),
            jax.ShapeDtypeStruct((N, Sp, num_heads), jnp.float32),
        ],
        scratch_shapes=[pltpu.VMEM((Bt, Sp, E), jnp.float32)],
        compiler_params=pltpu.CompilerParams(dimension_semantics=("parallel",)),
    )(x_nse, pos0, posr, wq_t, bq, wkv_t, bkv, sel, sel_t, wo_t, bo, wc_t, bc)

    # glue: drop seq padding and put heads in front (tiny array, plain XLA)
    att = jnp.transpose(att_raw[:, :T, :], (0, 2, 1))                      # (N, nh, S+1)
    return pooled[:, 0, :], att


def reference(x_nchw, params, num_heads):
    """Pure-JAX reference matching torch.nn.MultiheadAttention semantics."""
    N, C, H, W = x_nchw.shape
    S = H * W
    E = C
    hd = E // num_heads
    x = jnp.transpose(x_nchw.reshape(N, C, S), (0, 2, 1))                 # (N, S, E)
    mean = jnp.mean(x, axis=1, keepdims=True)
    tokens = jnp.concatenate([mean, x], axis=1) + params["pos"][None]     # (N, S+1, E)
    q = tokens[:, :1] @ params["wq"].T + params["bq"]
    k = tokens @ params["wk"].T + params["bk"]
    v = tokens @ params["wv"].T + params["bv"]
    qh = q.reshape(N, 1, num_heads, hd).transpose(0, 2, 1, 3)
    kh = k.reshape(N, S + 1, num_heads, hd).transpose(0, 2, 1, 3)
    vh = v.reshape(N, S + 1, num_heads, hd).transpose(0, 2, 1, 3)
    scores = jnp.einsum("nhqd,nhkd->nhqk", qh, kh) / math.sqrt(hd)
    attn = jax.nn.softmax(scores, axis=-1)                                # (N, nh, 1, S+1)
    ctx = jnp.einsum("nhqk,nhkd->nhqd", attn, vh)
    ctx = ctx.transpose(0, 2, 1, 3).reshape(N, 1, E)
    o = ctx @ params["wo"].T + params["bo"]
    out = o @ params["wc"].T + params["bc"]
    return out[:, 0], attn[:, :, 0, :]


if __name__ == "__main__":
    # small shapes consistent with the module
    N = 2                 # batch
    spacial_dim = 4       # H = W = 4  -> S = 16, tokens = 17
    E = 32                # embed_dim (= input channels)
    num_heads = 4
    out_dim = 16          # output_dim of c_proj
    S = spacial_dim * spacial_dim

    key = jax.random.PRNGKey(0)
    ks = jax.random.split(key, 8)
    pos = jax.random.normal(ks[0], (S + 1, E), jnp.float32) / math.sqrt(E)
    in_proj_w = jax.random.normal(ks[1], (3 * E, E), jnp.float32) * 0.1
    in_proj_b = jax.random.normal(ks[2], (3 * E,), jnp.float32) * 0.1
    wo = jax.random.normal(ks[3], (E, E), jnp.float32) * 0.1
    bo = jax.random.normal(ks[4], (E,), jnp.float32) * 0.1
    wc = jax.random.normal(ks[5], (out_dim, E), jnp.float32) * 0.1
    bc = jax.random.normal(ks[6], (out_dim,), jnp.float32) * 0.1
    x = jax.random.normal(ks[7], (N, E, spacial_dim, spacial_dim), jnp.float32)

    params = dict(
        pos=pos,
        wq=in_proj_w[:E], wk=in_proj_w[E:2 * E], wv=in_proj_w[2 * E:],
        bq=in_proj_b[:E], bk=in_proj_b[E:2 * E], bv=in_proj_b[2 * E:],
        wo=wo, bo=bo, wc=wc, bc=bc,
    )

    pooled, att = attention_pool2d(x, params, num_heads)
    pooled = jax.block_until_ready(pooled)
    att = jax.block_until_ready(att)

    ref_pooled, ref_att = reference(x, params, num_heads)
    np.testing.assert_allclose(np.asarray(pooled), np.asarray(ref_pooled), rtol=1e-4, atol=1e-4)
    np.testing.assert_allclose(np.asarray(att), np.asarray(ref_att), rtol=1e-4, atol=1e-4)

    print("KERNEL_OK")
</pallas_src>

<mosaic_0001>
module attributes {stable_mosaic.version = 11 : i64} {
  func.func @attention_pool_kernel(%arg0: i32, %arg1: memref<2x16x32xf32, #tpu.memory_space<vmem>>, %arg2: memref<1x32xf32, #tpu.memory_space<vmem>>, %arg3: memref<16x32xf32, #tpu.memory_space<vmem>>, %arg4: memref<32x32xf32, #tpu.memory_space<vmem>>, %arg5: memref<1x32xf32, #tpu.memory_space<vmem>>, %arg6: memref<32x64xf32, #tpu.memory_space<vmem>>, %arg7: memref<1x64xf32, #tpu.memory_space<vmem>>, %arg8: memref<32x4xf32, #tpu.memory_space<vmem>>, %arg9: memref<4x32xf32, #tpu.memory_space<vmem>>, %arg10: memref<32x32xf32, #tpu.memory_space<vmem>>, %arg11: memref<1x32xf32, #tpu.memory_space<vmem>>, %arg12: memref<32x16xf32, #tpu.memory_space<vmem>>, %arg13: memref<1x16xf32, #tpu.memory_space<vmem>>, %arg14: memref<2x1x16xf32, #tpu.memory_space<vmem>>, %arg15: memref<2x24x4xf32, #tpu.memory_space<vmem>>, %arg16: memref<2x24x32xf32, #tpu.memory_space<vmem>>) attributes {dimension_semantics = [#tpu.dimension_semantics<parallel>], iteration_bounds = array<i64: 1>, scalar_prefetch = 0 : i64, scratch_operands = 1 : i64, tpu.core_type = #tpu.core_type<tc>, window_params = [{transform_indices = @transform_0, window_bounds = array<i64: 2, 16, 32>}, {pipeline_mode = #tpu.pipeline_mode<synchronous>, transform_indices = @transform_1, window_bounds = array<i64: 1, 32>}, {pipeline_mode = #tpu.pipeline_mode<synchronous>, transform_indices = @transform_2, window_bounds = array<i64: 16, 32>}, {pipeline_mode = #tpu.pipeline_mode<synchronous>, transform_indices = @transform_3, window_bounds = array<i64: 32, 32>}, {pipeline_mode = #tpu.pipeline_mode<synchronous>, transform_indices = @transform_4, window_bounds = array<i64: 1, 32>}, {pipeline_mode = #tpu.pipeline_mode<synchronous>, transform_indices = @transform_5, window_bounds = array<i64: 32, 64>}, {pipeline_mode = #tpu.pipeline_mode<synchronous>, transform_indices = @transform_6, window_bounds = array<i64: 1, 64>}, {pipeline_mode = #tpu.pipeline_mode<synchronous>, transform_indices = @transform_7, window_bounds = array<i64: 32, 4>}, {pipeline_mode = #tpu.pipeline_mode<synchronous>, transform_indices = @transform_8, window_bounds = array<i64: 4, 32>}, {pipeline_mode = #tpu.pipeline_mode<synchronous>, transform_indices = @transform_9, window_bounds = array<i64: 32, 32>}, {pipeline_mode = #tpu.pipeline_mode<synchronous>, transform_indices = @transform_10, window_bounds = array<i64: 1, 32>}, {pipeline_mode = #tpu.pipeline_mode<synchronous>, transform_indices = @transform_11, window_bounds = array<i64: 32, 16>}, {pipeline_mode = #tpu.pipeline_mode<synchronous>, transform_indices = @transform_12, window_bounds = array<i64: 1, 16>}, {transform_indices = @transform_13, window_bounds = array<i64: 2, 1, 16>}, {transform_indices = @transform_14, window_bounds = array<i64: 2, 24, 4>}]} {
    %c0 = arith.constant 0 : index
    %c0_0 = arith.constant 0 : index
    %c0_1 = arith.constant 0 : index
    %0 = vector.load %arg1[%c0, %c0_0, %c0_1] : memref<2x16x32xf32, #tpu.memory_space<vmem>>, vector<2x16x32xf32>
    %cst = arith.constant dense<0.000000e+00> : vector<2x32xf32>
    %1 = vector.multi_reduction <add>, %0, %cst [1] : vector<2x16x32xf32> to vector<2x32xf32>
    %cst_2 = arith.constant 6.250000e-02 : f32
    %2 = vector.broadcast %cst_2 : f32 to vector<2x32xf32>
    %3 = arith.mulf %1, %2 : vector<2x32xf32>
    %c0_3 = arith.constant 0 : index
    %c0_4 = arith.constant 0 : index
    %4 = vector.load %arg2[%c0_3, %c0_4] : memref<1x32xf32, #tpu.memory_space<vmem>>, vector<1x32xf32>
    %5 = vector.broadcast %4 : vector<1x32xf32> to vector<2x32xf32>
    %6 = arith.addf %3, %5 : vector<2x32xf32>
    %7 = vector.shape_cast %6 : vector<2x32xf32> to vector<2x1x32xf32>
    %c0_5 = arith.constant 0 : index
    %c0_6 = arith.constant 0 : index
    %c0_7 = arith.constant 0 : index
    %8 = vector.load %arg16[%c0_5, %c0_6, %c0_7] : memref<2x24x32xf32, #tpu.memory_space<vmem>>, vector<2x1x32xf32>
    tpu.vector_store %arg16[%c0_5, %c0_6, %c0_7], %7 {strides = array<i32>} : memref<2x24x32xf32, #tpu.memory_space<vmem>>, vector<2x1x32xf32>,
    %c0_8 = arith.constant 0 : index
    %c0_9 = arith.constant 0 : index
    %9 = vector.load %arg3[%c0_8, %c0_9] : memref<16x32xf32, #tpu.memory_space<vmem>>, vector<16x32xf32>
    %10 = vector.shape_cast %9 : vector<16x32xf32> to vector<1x16x32xf32>
    %11 = vector.broadcast %10 : vector<1x16x32xf32> to vector<2x16x32xf32>
    %12 = arith.addf %0, %11 : vector<2x16x32xf32>
    %c0_10 = arith.constant 0 : index
    %c1 = arith.constant 1 : index
    %c0_11 = arith.constant 0 : index
    %13 = vector.load %arg16[%c0_10, %c1, %c0_11] : memref<2x24x32xf32, #tpu.memory_space<vmem>>, vector<2x16x32xf32>
    tpu.vector_store %arg16[%c0_10, %c1, %c0_11], %12 {strides = array<i32>} : memref<2x24x32xf32, #tpu.memory_space<vmem>>, vector<2x16x32xf32>,
    %cst_12 = arith.constant 0.000000e+00 : f32
    %14 = vector.broadcast %cst_12 : f32 to vector<2x7x32xf32>
    %c0_13 = arith.constant 0 : index
    %c17 = arith.constant 17 : index
    %c0_14 = arith.constant 0 : index
    %15 = vector.load %arg16[%c0_13, %c17, %c0_14] : memref<2x24x32xf32, #tpu.memory_space<vmem>>, vector<2x7x32xf32>
    tpu.vector_store %arg16[%c0_13, %c17, %c0_14], %14 {strides = array<i32>} : memref<2x24x32xf32, #tpu.memory_space<vmem>>, vector<2x7x32xf32>,
    %c0_15 = arith.constant 0 : index
    %c0_16 = arith.constant 0 : index
    %c0_17 = arith.constant 0 : index
    %16 = vector.load %arg16[%c0_15, %c0_16, %c0_17] : memref<2x24x32xf32, #tpu.memory_space<vmem>>, vector<2x24x32xf32>
    %17 = vector.shape_cast %16 : vector<2x24x32xf32> to vector<48x32xf32>
    %c0_18 = arith.constant 0 : index
    %c0_19 = arith.constant 0 : index
    %18 = vector.load %arg6[%c0_18, %c0_19] : memref<32x64xf32, #tpu.memory_space<vmem>>, vector<32x64xf32>
    %cst_20 = arith.constant dense<0.000000e+00> : vector<48x64xf32>
    %19 = tpu.matmul %17, %18, %cst_20 {dimension_numbers = #tpu.dot_dimension_numbers<[1], [0], [0], [1], [0, 0, 1, 1], [], []>} : vector<48x32xf32>, vector<32x64xf32>, vector<48x64xf32> -> vector<48x64xf32>
    %c0_21 = arith.constant 0 : index
    %c0_22 = arith.constant 0 : index
    %20 = vector.load %arg7[%c0_21, %c0_22] : memref<1x64xf32, #tpu.memory_space<vmem>>, vector<1x64xf32>
    %21 = vector.broadcast %20 : vector<1x64xf32> to vector<48x64xf32>
    %22 = arith.addf %19, %21 : vector<48x64xf32>
    %23 = vector.extract_strided_slice %22 {offsets = [0, 0], sizes = [48, 32], strides = [1, 1]} : vector<48x64xf32> to vector<48x32xf32>
    %24 = vector.extract_strided_slice %22 {offsets = [0, 32], sizes = [48, 32], strides = [1, 1]} : vector<48x64xf32> to vector<48x32xf32>
    %c0_23 = arith.constant 0 : index
    %c0_24 = arith.constant 0 : index
    %25 = vector.load %arg4[%c0_23, %c0_24] : memref<32x32xf32, #tpu.memory_space<vmem>>, vector<32x32xf32>
    %cst_25 = arith.constant dense<0.000000e+00> : vector<2x32xf32>
    %26 = tpu.matmul %6, %25, %cst_25 {dimension_numbers = #tpu.dot_dimension_numbers<[1], [0], [0], [1], [0, 0, 1, 1], [], []>} : vector<2x32xf32>, vector<32x32xf32>, vector<2x32xf32> -> vector<2x32xf32>
    %c0_26 = arith.constant 0 : index
    %c0_27 = arith.constant 0 : index
    %27 = vector.load %arg5[%c0_26, %c0_27] : memref<1x32xf32, #tpu.memory_space<vmem>>, vector<1x32xf32>
    %28 = vector.broadcast %27 : vector<1x32xf32> to vector<2x32xf32>
    %29 = arith.addf %26, %28 : vector<2x32xf32>
    %cst_28 = arith.constant 0.353553385 : f32
    %30 = vector.broadcast %cst_28 : f32 to vector<2x32xf32>
    %31 = arith.mulf %29, %30 : vector<2x32xf32>
    %32 = vector.shape_cast %31 : vector<2x32xf32> to vector<2x1x32xf32>
    %33 = vector.shape_cast %32 : vector<2x1x32xf32> to vector<2x1x32xf32>
    %34 = vector.broadcast %33 : vector<2x1x32xf32> to vector<2x24x32xf32>
    %35 = vector.shape_cast %34 : vector<2x24x32xf32> to vector<48x32xf32>
    %36 = arith.mulf %35, %23 : vector<48x32xf32>
    %c0_29 = arith.constant 0 : index
    %c0_30 = arith.constant 0 : index
    %37 = vector.load %arg8[%c0_29, %c0_30] : memref<32x4xf32, #tpu.memory_space<vmem>>, vector<32x4xf32>
    %cst_31 = arith.constant dense<0.000000e+00> : vector<48x4xf32>
    %38 = tpu.matmul %36, %37, %cst_31 {dimension_numbers = #tpu.dot_dimension_numbers<[1], [0], [0], [1], [0, 0, 1, 1], [], []>} : vector<48x32xf32>, vector<32x4xf32>, vector<48x4xf32> -> vector<48x4xf32>
    %39 = vector.shape_cast %38 : vector<48x4xf32> to vector<2x24x4xf32>
    %40 = tpu.iota {dimensions = array<i32: 1>} : vector<2x24x4xi32>
    %c17_i32 = arith.constant 17 : i32
    %41 = vector.broadcast %c17_i32 : i32 to vector<2x24x4xi32>
    %42 = arith.cmpi slt, %40, %41 : vector<2x24x4xi32>
    %cst_32 = arith.constant -1.000000e+30 : f32
    %43 = vector.broadcast %cst_32 : f32 to vector<2x24x4xf32>
    %44 = arith.select %42, %39, %43 : vector<2x24x4xi1>, vector<2x24x4xf32>
    %cst_33 = arith.constant dense<0xFF800000> : vector<2x4xf32>
    %45 = vector.multi_reduction <maximumf>, %44, %cst_33 [1] : vector<2x24x4xf32> to vector<2x4xf32>
    %46 = vector.shape_cast %45 : vector<2x4xf32> to vector<2x1x4xf32>
    %47 = vector.broadcast %46 : vector<2x1x4xf32> to vector<2x24x4xf32>
    %48 = arith.subf %44, %47 : vector<2x24x4xf32>
    %49 = math.exp %48 : vector<2x24x4xf32>
    %cst_34 = arith.constant dense<0.000000e+00> : vector<2x4xf32>
    %50 = vector.multi_reduction <add>, %49, %cst_34 [1] : vector<2x24x4xf32> to vector<2x4xf32>
    %51 = vector.shape_cast %50 : vector<2x4xf32> to vector<2x1x4xf32>
    %52 = vector.broadcast %51 : vector<2x1x4xf32> to vector<2x24x4xf32>
    %53 = arith.divf %49, %52 : vector<2x24x4xf32>
    %c0_35 = arith.constant 0 : index
    %c0_36 = arith.constant 0 : index
    %c0_37 = arith.constant 0 : index
    %54 = vector.load %arg15[%c0_35, %c0_36, %c0_37] : memref<2x24x4xf32, #tpu.memory_space<vmem>>, vector<2x24x4xf32>
    tpu.vector_store %arg15[%c0_35, %c0_36, %c0_37], %53 {strides = array<i32>} : memref<2x24x4xf32, #tpu.memory_space<vmem>>, vector<2x24x4xf32>,
    %55 = vector.shape_cast %53 : vector<2x24x4xf32> to vector<48x4xf32>
    %c0_38 = arith.constant 0 : index
    %c0_39 = arith.constant 0 : index
    %56 = vector.load %arg9[%c0_38, %c0_39] : memref<4x32xf32, #tpu.memory_space<vmem>>, vector<4x32xf32>
    %cst_40 = arith.constant dense<0.000000e+00> : vector<48x32xf32>
    %57 = tpu.matmul %55, %56, %cst_40 {dimension_numbers = #tpu.dot_dimension_numbers<[1], [0], [0], [1], [0, 0, 1, 1], [], []>} : vector<48x4xf32>, vector<4x32xf32>, vector<48x32xf32> -> vector<48x32xf32>
    %58 = arith.mulf %57, %24 : vector<48x32xf32>
    %59 = vector.shape_cast %58 : vector<48x32xf32> to vector<2x24x32xf32>
    %cst_41 = arith.constant dense<0.000000e+00> : vector<2x32xf32>
    %60 = vector.multi_reduction <add>, %59, %cst_41 [1] : vector<2x24x32xf32> to vector<2x32xf32>
    %c0_42 = arith.constant 0 : index
    %c0_43 = arith.constant 0 : index
    %61 = vector.load %arg10[%c0_42, %c0_43] : memref<32x32xf32, #tpu.memory_space<vmem>>, vector<32x32xf32>
    %cst_44 = arith.constant dense<0.000000e+00> : vector<2x32xf32>
    %62 = tpu.matmul %60, %61, %cst_44 {dimension_numbers = #tpu.dot_dimension_numbers<[1], [0], [0], [1], [0, 0, 1, 1], [], []>} : vector<2x32xf32>, vector<32x32xf32>, vector<2x32xf32> -> vector<2x32xf32>
    %c0_45 = arith.constant 0 : index
    %c0_46 = arith.constant 0 : index
    %63 = vector.load %arg11[%c0_45, %c0_46] : memref<1x32xf32, #tpu.memory_space<vmem>>, vector<1x32xf32>
    %64 = vector.broadcast %63 : vector<1x32xf32> to vector<2x32xf32>
    %65 = arith.addf %62, %64 : vector<2x32xf32>
    %c0_47 = arith.constant 0 : index
    %c0_48 = arith.constant 0 : index
    %66 = vector.load %arg12[%c0_47, %c0_48] : memref<32x16xf32, #tpu.memory_space<vmem>>, vector<32x16xf32>
    %cst_49 = arith.constant dense<0.000000e+00> : vector<2x16xf32>
    %67 = tpu.matmul %65, %66, %cst_49 {dimension_numbers = #tpu.dot_dimension_numbers<[1], [0], [0], [1], [0, 0, 1, 1], [], []>} : vector<2x32xf32>, vector<32x16xf32>, vector<2x16xf32> -> vector<2x16xf32>
    %c0_50 = arith.constant 0 : index
    %c0_51 = arith.constant 0 : index
    %68 = vector.load %arg13[%c0_50, %c0_51] : memref<1x16xf32, #tpu.memory_space<vmem>>, vector<1x16xf32>
    %69 = vector.broadcast %68 : vector<1x16xf32> to vector<2x16xf32>
    %70 = arith.addf %67, %69 : vector<2x16xf32>
    %71 = vector.shape_cast %70 : vector<2x16xf32> to vector<2x1x16xf32>
    %c0_52 = arith.constant 0 : index
    %c0_53 = arith.constant 0 : index
    %c0_54 = arith.constant 0 : index
    %72 = vector.load %arg14[%c0_52, %c0_53, %c0_54] : memref<2x1x16xf32, #tpu.memory_space<vmem>>, vector<2x1x16xf32>
    tpu.vector_store %arg14[%c0_52, %c0_53, %c0_54], %71 {strides = array<i32>} : memref<2x1x16xf32, #tpu.memory_space<vmem>>, vector<2x1x16xf32>,
    return
  }
  func.func @transform_0(%arg0: i32) -> (i32, i32, i32) {
    %c0_i32 = arith.constant 0 : i32
    %c0_i32_0 = arith.constant 0 : i32
    %c0_i32_1 = arith.constant 0 : i32
    return %arg0, %c0_i32, %c0_i32_0 : i32, i32, i32
  }
  func.func @transform_1(%arg0: i32) -> (i32, i32) {
    %c0_i32 = arith.constant 0 : i32
    %c0_i32_0 = arith.constant 0 : i32
    %c0_i32_1 = arith.constant 0 : i32
    return %c0_i32, %c0_i32_0 : i32, i32
  }
  func.func @transform_2(%arg0: i32) -> (i32, i32) {
    %c0_i32 = arith.constant 0 : i32
    %c0_i32_0 = arith.constant 0 : i32
    %c0_i32_1 = arith.constant 0 : i32
    return %c0_i32, %c0_i32_0 : i32, i32
  }
  func.func @transform_3(%arg0: i32) -> (i32, i32) {
    %c0_i32 = arith.constant 0 : i32
    %c0_i32_0 = arith.constant 0 : i32
    %c0_i32_1 = arith.constant 0 : i32
    return %c0_i32, %c0_i32_0 : i32, i32
  }
  func.func @transform_4(%arg0: i32) -> (i32, i32) {
    %c0_i32 = arith.constant 0 : i32
    %c0_i32_0 = arith.constant 0 : i32
    %c0_i32_1 = arith.constant 0 : i32
    return %c0_i32, %c0_i32_0 : i32, i32
  }
  func.func @transform_5(%arg0: i32) -> (i32, i32) {
    %c0_i32 = arith.constant 0 : i32
    %c0_i32_0 = arith.constant 0 : i32
    %c0_i32_1 = arith.constant 0 : i32
    return %c0_i32, %c0_i32_0 : i32, i32
  }
  func.func @transform_6(%arg0: i32) -> (i32, i32) {
    %c0_i32 = arith.constant 0 : i32
    %c0_i32_0 = arith.constant 0 : i32
    %c0_i32_1 = arith.constant 0 : i32
    return %c0_i32, %c0_i32_0 : i32, i32
  }
  func.func @transform_7(%arg0: i32) -> (i32, i32) {
    %c0_i32 = arith.constant 0 : i32
    %c0_i32_0 = arith.constant 0 : i32
    %c0_i32_1 = arith.constant 0 : i32
    return %c0_i32, %c0_i32_0 : i32, i32
  }
  func.func @transform_8(%arg0: i32) -> (i32, i32) {
    %c0_i32 = arith.constant 0 : i32
    %c0_i32_0 = arith.constant 0 : i32
    %c0_i32_1 = arith.constant 0 : i32
    return %c0_i32, %c0_i32_0 : i32, i32
  }
  func.func @transform_9(%arg0: i32) -> (i32, i32) {
    %c0_i32 = arith.constant 0 : i32
    %c0_i32_0 = arith.constant 0 : i32
    %c0_i32_1 = arith.constant 0 : i32
    return %c0_i32, %c0_i32_0 : i32, i32
  }
  func.func @transform_10(%arg0: i32) -> (i32, i32) {
    %c0_i32 = arith.constant 0 : i32
    %c0_i32_0 = arith.constant 0 : i32
    %c0_i32_1 = arith.constant 0 : i32
    return %c0_i32, %c0_i32_0 : i32, i32
  }
  func.func @transform_11(%arg0: i32) -> (i32, i32) {
    %c0_i32 = arith.constant 0 : i32
    %c0_i32_0 = arith.constant 0 : i32
    %c0_i32_1 = arith.constant 0 : i32
    return %c0_i32, %c0_i32_0 : i32, i32
  }
  func.func @transform_12(%arg0: i32) -> (i32, i32) {
    %c0_i32 = arith.constant 0 : i32
    %c0_i32_0 = arith.constant 0 : i32
    %c0_i32_1 = arith.constant 0 : i32
    return %c0_i32, %c0_i32_0 : i32, i32
  }
  func.func @transform_13(%arg0: i32) -> (i32, i32, i32) {
    %c0_i32 = arith.constant 0 : i32
    %c0_i32_0 = arith.constant 0 : i32
    %c0_i32_1 = arith.constant 0 : i32
    return %arg0, %c0_i32, %c0_i32_0 : i32, i32, i32
  }
  func.func @transform_14(%arg0: i32) -> (i32, i32, i32) {
    %c0_i32 = arith.constant 0 : i32
    %c0_i32_0 = arith.constant 0 : i32
    %c0_i32_1 = arith.constant 0 : i32
    return %arg0, %c0_i32, %c0_i32_0 : i32, i32, i32
  }
}

</mosaic_0001>

<bundles_post_ra>
// kernel: tpu_custom_call.1
= control target key start
LH: loop header
LB: loop body
LE: loop exit
PB: predicated region body
PF: predicated region fallthrough
CT: control target
= control target key end

     0   :  { %20 = vsyncpa [#allocation4], 0  ;;  %s1669_s0 = inlined_call_operand.vmem [shape: f32[2,16,32], index: 0, kind: input, shape index: {}]   ;;  %s1670_s1 = inlined_call_operand.vmem [shape: f32[1,32], index: 1, kind: input, shape index: {}]   ;;  %s1671_s2 = inlined_call_operand.hbm [shape: f32[16,32], index: 2, kind: input, shape index: {}]   ;;  %s1672_s3 = inlined_call_operand.vmem [shape: f32[32,32], index: 3, kind: input, shape index: {}]   ;;  %s1673_s4 = inlined_call_operand.vmem [shape: f32[1,32], index: 4, kind: input, shape index: {}]   ;;  %s1674_s5 = inlined_call_operand.vmem [shape: f32[32,64], index: 5, kind: input, shape index: {}]   ;;  %s1675_s6 = inlined_call_operand.hbm [shape: f32[1,64], index: 6, kind: input, shape index: {}]   ;;  %s1676_s7 = inlined_call_operand.vmem [shape: f32[32,4], index: 7, kind: input, shape index: {}]   ;;  %s1677_s8 = inlined_call_operand.hbm [shape: f32[4,32], index: 8, kind: input, shape index: {}]   ;;  %s1678_s9 = inlined_call_operand.hbm [shape: f32[32,32], index: 9, kind: input, shape index: {}]   ;;  %s1679_s10 = inlined_call_operand.vmem [shape: f32[1,32], index: 10, kind: input, shape index: {}]   ;;  %s1680_s11 = inlined_call_operand.vmem [shape: f32[32,16], index: 11, kind: input, shape index: {}]   ;;  %s1681_s12 = inlined_call_operand.vmem [shape: f32[1,16], index: 12, kind: input, shape index: {}]   ;;  %s1682_s13 = inlined_call_operand.hbm [shape: f32[2,1,16], index: 13, kind: output, shape index: {0}]   ;;  %s1683_s14 = inlined_call_operand.vmem [shape: f32[2,24,4], index: 14, kind: output, shape index: {1}]  }
   0x1   :  { %21 = vsyncpa [#allocation7], 0 }
   0x2   :  { %22 = vsyncpa [#allocation10], 0 }
   0x3   :  { %23 = vsyncpa [#allocation5], 0  ;;  %s1333_s29 = smov [#allocation6]   ;;  %s1334_s15 = smov [#allocation3]  }
   0x4   :  { %s52_s30 = sshll.u32 %s1333_s29, 4  ;;  %s33_s16 = sshll.u32 %s1334_s15, 4  ;;  %s53_s30 = int_to_ptr.vmem [resolvable:$true] %s52_s30  ;;  %s1422_s16 = int_to_ptr.vmem [resolvable:$true] %s33_s16 }
   0x5   :  { %s1215_s19 = scalar_lea.hbm %s1675_s6, 16 }
   0x6   :  { %p1216_p0 = scmp.ne.s32.totalorder %s1675_s6, %s1215_s19  ;;  %p1219_p1 = scmp.lt.u32.totalorder %s1215_s19, %s1675_s6 }
   0x8   :  { %p1221_p2 = pnand %p1219_p1, %p1216_p0 }
   0xa   :  { %1224 = shalt.err (!%p1221_p2)
}
   0xb   :  { %s1225_s24 = scalar_lea.vmem %s53_s30, 16  ;;  %s1229_s25 = scalar_lea.vmem %s53_s30, 32 }
   0xc   :  { %p1226_p3 = scmp.ne.s32.totalorder %s53_s30, %s1225_s24  ;;  %p1230_p4 = scmp.lt.s32.totalorder %s53_s30, %s53_s30 }
   0xd   :  { %p1231_p5 = scmp.lt.s32.totalorder %s1229_s25, %s1225_s24 }
   0xf   :  { %p1232_p6 = por %p1231_p5, %p1230_p4 }
  0x11   :  { %p1233_p7 = pnand %p1232_p6, %p1226_p3 }
  0x13   :  { %1236 = shalt.err (!%p1233_p7)
}
  0x14   :  { %55 = dma.hbm_to_vmem [thread:$0]  %s1675_s6, 16, %s53_s30, [#allocation7]  }
  0x15   :  { %s1237_s15 = scalar_lea.hbm %s1671_s2, 256 }
  0x16   :  { %p1238_p8 = scmp.ne.s32.totalorder %s1671_s2, %s1237_s15  ;;  %p1241_p9 = scmp.lt.u32.totalorder %s1237_s15, %s1671_s2 }
  0x18   :  { %p1243_p10 = pnand %p1241_p9, %p1238_p8 }
  0x1a   :  { %1246 = shalt.err (!%p1243_p10)
}
  0x1b   :  { %s1247_s21 = scalar_lea.vmem %s1422_s16, 256  ;;  %p1252_p12 = scmp.lt.s32.totalorder %s1422_s16, %s1422_s16 }
  0x1c   :  { %p1248_p11 = scmp.ne.s32.totalorder %s1422_s16, %s1247_s21  ;;  %p1253_p13 = scmp.lt.s32.totalorder %s1247_s21, %s1247_s21 }
  0x1e   :  { %p1254_p0 = por %p1253_p13, %p1252_p12 }
  0x20   :  { %p1255_p1 = pnand %p1254_p0, %p1248_p11 }
  0x22   :  { %1258 = shalt.err (!%p1255_p1)
}
  0x23   :  { %s1335_s6 = smov 128   ;;  %s1336_s30 = smov 8  }
  0x24   :  { %39 = dma.hbm_to_vmem [thread:$0]  %s1671_s2, 256, %s1422_s16, [#allocation4], %s1335_s6, %s1335_s6, %s1336_s30  }
  0x25   :  { %s1337_s24 = smov [#allocation8]   ;;  %s1338_s26 = smov [#allocation9]  }
  0x26   :  { %s64_s25 = sshll.u32 %s1337_s24, 4  ;;  %s73_s27 = sshll.u32 %s1338_s26, 4  ;;  %s65_s25 = int_to_ptr.vmem [resolvable:$true] %s64_s25  ;;  %s1456_s27 = int_to_ptr.vmem [resolvable:$true] %s73_s27 }
  0x27   :  { %s1259_s15 = scalar_lea.hbm %s1677_s8, 64 }
  0x28   :  { %p1260_p2 = scmp.ne.s32.totalorder %s1677_s8, %s1259_s15  ;;  %p1263_p3 = scmp.lt.u32.totalorder %s1259_s15, %s1677_s8 }
  0x2a   :  { %p1265_p4 = pnand %p1263_p3, %p1260_p2 }
  0x2c   :  { %1268 = shalt.err (!%p1265_p4)
}
  0x2d   :  { %s1269_s2 = scalar_lea.vmem %s65_s25, 64  ;;  %p1274_p6 = scmp.lt.s32.totalorder %s65_s25, %s65_s25 }
  0x2e   :  { %p1270_p5 = scmp.ne.s32.totalorder %s65_s25, %s1269_s2  ;;  %p1275_p7 = scmp.lt.s32.totalorder %s1269_s2, %s1269_s2 }
  0x30   :  { %p1276_p8 = por %p1275_p7, %p1274_p6 }
  0x32   :  { %p1277_p9 = pnand %p1276_p8, %p1270_p5 }
  0x34   :  { %1280 = shalt.err (!%p1277_p9)
}
  0x35   :  { %67 = dma.hbm_to_vmem [thread:$0]  %s1677_s8, 64, %s65_s25, [#allocation7]  }
  0x36   :  { %s1281_s24 = scalar_lea.hbm %s1678_s9, 512 }
  0x37   :  { %p1282_p10 = scmp.ne.s32.totalorder %s1678_s9, %s1281_s24  ;;  %p1285_p11 = scmp.lt.u32.totalorder %s1281_s24, %s1678_s9 }
  0x39   :  { %p1287_p12 = pnand %p1285_p11, %p1282_p10 }
  0x3b   :  { %1290 = shalt.err (!%p1287_p12)
}
  0x3c   :  { %s1291_s17 = scalar_lea.vmem %s1456_s27, 512  ;;  %p1296_p0 = scmp.lt.s32.totalorder %s1456_s27, %s1456_s27 }
  0x3d   :  { %p1292_p13 = scmp.ne.s32.totalorder %s1456_s27, %s1291_s17  ;;  %p1297_p1 = scmp.lt.s32.totalorder %s1291_s17, %s1291_s17 }
  0x3f   :  { %p1298_p2 = por %p1297_p1, %p1296_p0 }
  0x41   :  { %p1299_p3 = pnand %p1298_p2, %p1292_p13 }
  0x43   :  { %1302 = shalt.err (!%p1299_p3)
}
  0x44   :  { %79 = dma.hbm_to_vmem [thread:$0]  %s1678_s9, 512, %s1456_s27, [#allocation10], %s1335_s6, %s1335_s6, %s1336_s30  }
  0x45   :  { %1325 = dma.done.wait [#allocation4], 256  }
  0x46   :  { %1326 = vsyncadd [#allocation4], 4294967040 }
  0x47   :  { %1327 = dma.done.wait [#allocation7], 80  }
  0x48   :  { %1328 = vsyncadd [#allocation7], 4294967216 }
  0x49   :  { %1329 = dma.done.wait [#allocation10], 512  }
  0x4a   :  { %1330 = vsyncadd [#allocation10], 4294966784  ;;  %vm145_vm0 = vcmask 260096   ;;  %v1339_v0 = vmov 0.0|0.0   ;;  %v1340_v1 = vmov 0.0   ;;  %vm1341_vm1 = vmmov 0  }
  0x4b   :  { %1159 = vmatprep.subr.bf16.mxu1 %v1339_v0  ;;  %146 = vst.msk [vmem:[#allocation2 + $0x11] sm:$0x7f] %vm145_vm0, %v1340_v1  ;;  %147 = vst.msk [vmem:[#allocation2 + $0x29] sm:$0x7f] %vm145_vm0, %v1340_v1  ;;  %1098 = vmatprep.mubr.msk.f32.mxu1 %vm1341_vm1, %v1340_v1  ;;  %v278_v2 = vld [vmem:[%s1672_s3] sm:$0xff]  ;;  %v279_v3 = vld [vmem:[%s1672_s3 + $0x8] sm:$0xff]  ;;  %v371_v63 = vlaneseq }
  0x4c   :  { %v280_v4 = vld [vmem:[%s1672_s3 + $0x10] sm:$0xff]  ;;  %vm102_vm2 = vcmask 261120   ;;  %v1160_v5 = vpack.c.bf16 %v279_v3, %v278_v2  ;;  %v281_v6 = vld [vmem:[%s1672_s3 + $0x18] sm:$0xff]  ;;  %v154_v7 = vld [vmem:[%s1674_s5] sm:$0xff]  ;;  %vm132_vm3 = vcmask 253952   ;;  %vm292_vm4 = vcmask 1041409  }
  0x4d   :  { %v155_v8 = vld [vmem:[%s1674_s5 + $0x8] sm:$0xff]  ;;  %v98_v10 = vld [vmem:[%s1669_s0] sm:$0xff]  ;;  %v100_v12 = vld [vmem:[%s1669_s0 + $0x10] sm:$0xff]  ;;  %v1163_v13 = vpack.c.bf16 %v281_v6, %v280_v4  ;;  %v1342_v61 = vmov 1966171168   ;;  %v372_v3 = vshrl.u32 %v371_v63, 7 }
  0x4e   :  { %v1151_v9 = vpack.c.bf16 %v155_v8, %v154_v7  ;;  %v99_v11 = vld [vmem:[%s1669_s0 + $0x8] sm:$0xff]  ;;  %1161 = vmatpush3.bf16.msra.mxu1 %v1160_v5  ;;  %v101_v14 = vld [vmem:[%s1669_s0 + $0x18] sm:$0xff]  ;;  %v103_v15 = vsel %vm102_vm2, %v98_v10, 0.0  ;;  %v112_v17 = vsel %vm102_vm2, %v100_v12, 0.0  ;;  %v135_v20 = vld [vmem:[#allocation3] sm:$0xff]  ;;  %v369_v62 = vunpack.c.l.s4 %v1342_v61  ;;  %s1344_s21 = smov [#allocation11]  }
  0x4f   :  { %v104_v16 = vsel %vm102_vm2, %v99_v11, 0.0  ;;  %1162 = vmatprep.subr.bf16.mxu1 %v1339_v0  ;;  %v113_v19 = vsel %vm102_vm2, %v101_v14, 0.0  ;;  %v136_v21 = vld [vmem:[#allocation3 + $0x8] sm:$0xff]  ;;  %v156_v22 = vld [vmem:[%s1674_s5 + $0x10] sm:$0xff]  ;;  %v137_v24 = vadd.f32 %v135_v20, %v98_v10  ;;  %v139_v26 = vadd.f32 %v135_v20, %v100_v12  ;;  %v1004_v42 = vld [vmem:[%s1670_s1] ss:$0 sm:$0xff] }
  0x50   :  { %1152 = vmatprep.subr.bf16.mxu0 %v1151_v9  ;;  %v105_v18 = vadd.f32 %v104_v16, %v103_v15  ;;  %v114_v23 = vadd.f32 %v113_v19, %v112_v17  ;;  %v138_v25 = vadd.f32 %v136_v21, %v99_v11  ;;  %v157_v27 = vld [vmem:[%s1674_s5 + $0x18] sm:$0xff]  ;;  %v140_v29 = vadd.f32 %v136_v21, %v101_v14  ;;  %v406_v55 = vld [vmem:[%s1676_s7] sm:$0xff]  ;;  %v407_v56 = vld [vmem:[%s1676_s7 + $0x8] sm:$0xff]  ;;  %s986_s22 = sshll.u32 %s1344_s21, 4  ;;  %s987_s22 = int_to_ptr.vmem [resolvable:$true] %s986_s22 }
  0x51   :  { %1154 = vmatpush3.bf16.msra.mxu0 %v1151_v9  ;;  %v1155_v30 = vpack.c.bf16 %v157_v27, %v156_v22  ;;  %141 = vst.msk [vmem:[#allocation2 + $0x1] sm:$0xff] %vm102_vm2, %v137_v24  ;;  %143 = vst.msk [vmem:[#allocation2 + $0x19] sm:$0xff] %vm102_vm2, %v139_v26  ;;  %v1165_v57 = vpack.c.bf16 %v407_v56, %v406_v55  ;;  %v408_v58 = vld [vmem:[%s1676_s7 + $0x10] sm:$0xff]  ;;  %v409_v59 = vld [vmem:[%s1676_s7 + $0x18] sm:$0xff]  ;;  %v370_v2 = vunpack.c.0.s8 %v369_v62  ;;  %s1343_s7 = smov 96   ;;  %vm632_vm5 = vcmask 1043456   ;;  %p1308_p5 = scmp.lt.s32.totalorder %s987_s22, %s987_s22 }
  0x52   :  { %v106_v28 = vrot.slane %v105_v18, 4  ;;  %1164 = vmatpush3.bf16.msra.mxu1 %v1163_v13  ;;  %v115_v31 = vrot.slane %v114_v23, 4  ;;  %142 = vst.msk [vmem:[#allocation2 + $0x9] sm:$0xff] %vm102_vm2, %v138_v25  ;;  %144 = vst.msk [vmem:[#allocation2 + $0x21] sm:$0xff] %vm102_vm2, %v140_v29  ;;  %v1169_v60 = vpack.c.bf16 %v409_v59, %v408_v58  ;;  %v1012_v4 = vld [vmem:[%s1673_s4] ss:$0 sm:$0xff] }
  0x53   :  { %1156 = vmatprep.subr.bf16.mxu0 %v1155_v30  ;;  %1166 = vmatprep.subr.bf16.mxu1 %v1165_v57  ;;  %v1567_v7 = vsub.s32 %v370_v2, %v372_v3  ;;  %v1005_v10 = vld [vmem:[#allocation6] ss:$0 sm:$0xff]  ;;  %v392_v13 = vsub.s32 0, %v372_v3  ;;  %vm536_vm7 = vcmask 31744   ;;  %vm978_vm8 = vcmask 122880  }
  0x54   :  { %v107_v32 = vadd.f32 %v106_v28, %v105_v18  ;;  %v116_v33 = vadd.f32 %v115_v31, %v114_v23 }
  0x55   :  { %1158 = vmatpush3.bf16.msra.mxu0 %v1155_v30 }
  0x56   :  { %v108_v34 = vrot.slane %v107_v32, 2  ;;  %v117_v35 = vrot.slane %v116_v33, 2 }
  0x58   :  { %v109_v36 = vadd.f32 %v108_v34, %v107_v32  ;;  %v118_v37 = vadd.f32 %v117_v35, %v116_v33 }
  0x59   :  { %v149_v49 = vld [vmem:[#allocation2 + $0x8] sm:$0xff]  ;;  %v150_v51 = vld [vmem:[#allocation2 + $0x10] sm:$0xff]  ;;  %v152_v53 = vld [vmem:[#allocation2 + $0x20] sm:$0xff] }
  0x5a   :  { %v110_v38 = vrot.slane %v109_v36, 1  ;;  %v119_v39 = vrot.slane %v118_v37, 1  ;;  %v153_v54 = vld [vmem:[#allocation2 + $0x28] sm:$0xff] }
  0x5c   :  { %v111_v40 = vadd.f32 %v110_v38, %v109_v36  ;;  %v120_v41 = vadd.f32 %v119_v39, %v118_v37  ;;  %v613_v36 = vld [vmem:[#allocation8] sm:$0xf]  ;;  %v526_v37 = vadd.s32 16, %v372_v3 }
  0x5d   :  { %1118 = vmatprep.subr.msk.mxu0 %vm632_vm5, %v613_v36 }
  0x5e   :  { %v121_v43 = vmul.f32 0.0625, %v111_v40  ;;  %v122_v44 = vmul.f32 0.0625, %v120_v41  ;;  %vm529_vm6 = vcmp.lt.s32.totalorder %v526_v37, 17 }
  0x60   :  { %v130_v45 = vadd.f32 %v1004_v42, %v121_v43  ;;  %v131_v46 = vadd.f32 %v1004_v42, %v122_v44 }
  0x62   :  { %133 = vst.msk [vmem:[#allocation2] sm:$0x1] %vm132_vm3, %v130_v45  ;;  %134 = vst.msk [vmem:[#allocation2 + $0x18] sm:$0x1] %vm132_vm3, %v131_v46  ;;  %v291_v47 = vrot.slane %v131_v46, 7 }
  0x64   :  { %v293_v48 = vsel %vm292_vm4, %v291_v47, %v130_v45 }
  0x65   :  { %1099 = vmatmul.mubr.msk.f32.vlgmr.msra.gmra.mrb[0].mxu1 %vm102_vm2, %v293_v48 }
  0x66   :  { %1168 = vmatpush3.bf16.msra.mxu1 %v1165_v57 }
  0x67   :  { %1170 = vmatprep.subr.bf16.mxu1 %v1169_v60 }
  0x69   :  { %v148_v50 = vld [vmem:[#allocation2] sm:$0xff]  ;;  %v151_v52 = vld [vmem:[#allocation2 + $0x18] sm:$0xff] }
  0x6a   :  { %1081 = vmatprep.mubr.msk.f32.mxu0 %vm102_vm2, %v148_v50  ;;  %1172 = vmatpush3.bf16.msra.mxu1 %v1169_v60 }
  0x6b   :  { %1082 = vmatmul.mubr.msk.f32.vlgmr.msra.gmra.mrb[0].mxu0 %vm102_vm2, %v149_v49  ;;  %1173 = vmatprep.subr.bf16.mxu1 %v1339_v0 }
  0x6c   :  { %1084 = vmatprep.mubr.msk.f32.mxu0 %vm102_vm2, %v150_v51  ;;  %1119 = vmatpush3.msk.msra.mxu0 %vm632_vm5, %v613_v36 }
  0x6d   :  { %1179 = vmatprep.subr.bf16.mxu0 %v1339_v0 }
  0x6f   :  { %1085 = vmatmul.mubr.msk.f32.gmra.mrb[2].mxu0 %vm102_vm2, %v151_v52 }
  0x70   :  { %1087 = vmatprep.mubr.msk.f32.mxu0 %vm102_vm2, %v152_v53 }
  0x73   :  { %1088 = vmatmul.mubr.msk.f32.gmra.mrb[4].mxu0 %vm102_vm2, %v153_v54 }
 0x138   :  { %v362_v5 = vpop.f32.mrb[0].mxu1 }
 0x139   :  { %v363_v6 = vadd.f32 %v1012_v4, %v362_v5  ;;  %v1100_v8 = vpop.f32.mrb[1].mxu1 }
 0x13b   :  { %v366_v9 = vmul.f32 0.35355338, %v363_v6 }
 0x13d   :  { %v374_v11 = vrot.slane %v366_v9, %v1567_v7 }
 0x13e   :  { %v1083_v12 = vpop.f32.mrb[0].mxu0 }
 0x13f   :  { %v255_v14 = vadd.f32 %v1083_v12, %v1005_v10  ;;  %v249_v15 = vpop.f32.mrb[1].mxu0  ;;  %v375_v16 = vcombine.high %v374_v11, %v374_v11  ;;  %v382_v17 = vrot.slane %v374_v11, %v1567_v7 }
 0x140   :  { %v250_v18 = vadd.f32 %v1005_v10, %v249_v15 }
 0x141   :  { %739 = vrot.lane.b32.xlu0 %v255_v14, %s1343_s7  ;;  %v389_v19 = vrot.slane %v375_v16, %v1567_v7  ;;  %v393_v20 = vrot.slane %v382_v17, %v392_v13 }
 0x142   :  { %v1086_v21 = vpop.f32.mrb[2].mxu0 }
 0x143   :  { %v265_v22 = vadd.f32 %v1086_v21, %v1005_v10  ;;  %v259_v23 = vpop.f32.mrb[3].mxu0  ;;  %v401_v24 = vmul.f32 %v393_v20, %v255_v14  ;;  %v400_v25 = vmul.f32 %v393_v20, %v250_v18  ;;  %v397_v26 = vrot.slane %v389_v19, %v392_v13 }
 0x144   :  { %v260_v27 = vadd.f32 %v1005_v10, %v259_v23 }
 0x145   :  { %737 = vrot.lane.b32.xlu0 %v250_v18, %s1343_s7  ;;  %743 = vrot.lane.b32.xlu1 %v265_v22, %s1343_s7  ;;  %v403_v28 = vmul.f32 %v397_v26, %v265_v22 }
 0x146   :  { %v402_v29 = vmul.f32 %v393_v20, %v260_v27  ;;  %1109 = vmatprep.mubr.msk.f32.mxu1 %vm102_vm2, %v400_v25  ;;  %v1089_v30 = vpop.f32.mrb[4].mxu0 }
 0x147   :  { %v275_v31 = vadd.f32 %v1089_v30, %v1005_v10  ;;  %1110 = vmatmul.mubr.msk.f32.vlgmr.msra.gmra.mrb[2].mxu1 %vm102_vm2, %v401_v24  ;;  %v269_v32 = vpop.f32.mrb[5].mxu0 }
 0x148   :  { %v270_v33 = vadd.f32 %v1005_v10, %v269_v32  ;;  %1112 = vmatprep.mubr.msk.f32.mxu1 %vm102_vm2, %v402_v29 }
 0x149   :  { %v405_v34 = vmul.f32 %v397_v26, %v275_v31  ;;  %741 = vrot.lane.b32.xlu0 %v260_v27, %s1343_s7 }
 0x14a   :  { %v404_v35 = vmul.f32 %v397_v26, %v270_v33  ;;  %745 = vrot.lane.b32.xlu1 %v270_v33, %s1343_s7 }
 0x14b   :  { %1113 = vmatmul.mubr.msk.f32.gmra.mrb[4].mxu1 %vm102_vm2, %v403_v28 }
 0x14c   :  { %1115 = vmatprep.mubr.msk.f32.mxu1 %vm102_vm2, %v404_v35 }
 0x14e   :  { %747 = vrot.lane.b32.xlu1 %v275_v31, %s1343_s7 }
 0x14f   :  { %1116 = vmatmul.mubr.msk.f32.gmra.mrb[6].mxu1 %vm102_vm2, %v405_v34 }
 0x150   :  { %1137 = vmatprep.mubr.msk.f32.mxu1 %vm1341_vm1, %v1340_v1 }
 0x21a   :  { %v1111_v38 = vpop.f32.mrb[2].mxu1 }
 0x21b   :  { %v494_v39 = vpop.f32.mrb[3].mxu1  ;;  %v538_v47 = vsel %vm536_vm7, %v1111_v38, -inf }
 0x21c   :  { %v537_v43 = vsel %vm536_vm7, %v494_v39, -inf }
 0x21e   :  { %v1114_v40 = vpop.f32.mrb[4].mxu1 }
 0x21f   :  { %v504_v41 = vpop.f32.mrb[5].mxu1  ;;  %v548_v50 = vsel %vm536_vm7, %v1114_v40, -inf }
 0x220   :  { %v532_v42 = vsel %vm529_vm6, %v504_v41, -1e+30 }
 0x221   :  { %v539_v44 = vsel %vm536_vm7, %v532_v42, -inf }
 0x222   :  { %v540_v45 = vmax.f32 %v537_v43, %v539_v44  ;;  %v1117_v46 = vpop.f32.mrb[6].mxu1 }
 0x223   :  { %v535_v48 = vsel %vm529_vm6, %v1117_v46, -1e+30  ;;  %v514_v49 = vpop.f32.mrb[7].mxu1 }
 0x224   :  { %v541_v51 = vmax.f32 %v540_v45, %v538_v47  ;;  %v550_v52 = vsel %vm536_vm7, %v535_v48, -inf  ;;  %v549_v55 = vsel %vm536_vm7, %v514_v49, -inf }
 0x225   :  { %v551_v53 = vmax.f32 %v548_v50, %v550_v52 }
 0x226   :  { %v542_v54 = vrot.slane %v541_v51, 4 }
 0x227   :  { %v552_v56 = vmax.f32 %v551_v53, %v549_v55  ;;  %v783_v55 = vld [vmem:[#allocation9] sm:$0xff] }
 0x228   :  { %v543_v57 = vmax.f32 %v541_v51, %v542_v54 }
 0x229   :  { %v553_v58 = vrot.slane %v552_v56, 4 }
 0x22a   :  { %v544_v59 = vrot.slane %v543_v57, 2 }
 0x22b   :  { %v554_v60 = vmax.f32 %v552_v56, %v553_v58  ;;  %v784_v56 = vld [vmem:[#allocation9 + $0x8] sm:$0xff]  ;;  %v785_v58 = vld [vmem:[#allocation9 + $0x10] sm:$0xff] }
 0x22c   :  { %v545_v61 = vmax.f32 %v543_v57, %v544_v59  ;;  %v1174_v57 = vpack.c.bf16 %v784_v56, %v783_v55  ;;  %v786_v59 = vld [vmem:[#allocation9 + $0x18] sm:$0xff] }
 0x22d   :  { %v555_v62 = vrot.slane %v554_v60, 2 }
 0x22e   :  { %v546_v63 = vrot.slane %v545_v61, 1  ;;  %1175 = vmatpush3.bf16.msra.mxu1 %v1174_v57 }
 0x22f   :  { %v556_v2 = vmax.f32 %v554_v60, %v555_v62  ;;  %1176 = vmatprep.subr.bf16.mxu1 %v1339_v0  ;;  %v1177_v60 = vpack.c.bf16 %v786_v59, %v785_v58  ;;  %v870_v62 = vld [vmem:[%s1680_s11 + $0x8] sm:$0xff] }
 0x230   :  { %v547_v3 = vmax.f32 %v545_v61, %v546_v63  ;;  %v869_v61 = vld [vmem:[%s1680_s11] sm:$0xff] }
 0x231   :  { %v557_v4 = vrot.slane %v556_v2, 1  ;;  %v1180_v63 = vpack.c.bf16 %v870_v62, %v869_v61 }
 0x232   :  { %v559_v5 = vsub.f32 %v494_v39, %v547_v3  ;;  %v560_v6 = vsub.f32 %v1111_v38, %v547_v3  ;;  %v561_v8 = vsub.f32 %v532_v42, %v547_v3  ;;  %1178 = vmatpush3.bf16.msra.mxu1 %v1177_v60 }
 0x233   :  { %v558_v9 = vmax.f32 %v556_v2, %v557_v4  ;;  %v872_v2 = vld [vmem:[%s1680_s11 + $0x18] sm:$0xff]  ;;  %v740_v4 = vpop.permute.xlu0 %739 }
 0x234   :  { %v565_v10 = vmul.f32 1.442695, %v559_v5  ;;  %v567_v11 = vmul.f32 1.442695, %v560_v6  ;;  %v569_v12 = vmul.f32 1.442695, %v561_v8  ;;  %v744_v5 = vpop.permute.xlu1 %743 }
 0x235   :  { %v562_v13 = vsub.f32 %v1114_v40, %v558_v9  ;;  %v563_v14 = vsub.f32 %v514_v49, %v558_v9  ;;  %v564_v15 = vsub.f32 %v535_v48, %v558_v9 }
 0x236   :  { %1199 = vpow2.f32 %v565_v10 }
 0x237   :  { %1201 = vpow2.f32 %v567_v11  ;;  %v571_v16 = vmul.f32 1.442695, %v562_v13  ;;  %v573_v17 = vmul.f32 1.442695, %v563_v14  ;;  %v575_v18 = vmul.f32 1.442695, %v564_v15  ;;  %v738_v6 = vpop.permute.xlu0 %737 }
 0x238   :  { %1203 = vpow2.f32 %v569_v12  ;;  %v746_v12 = vpop.permute.xlu1 %745 }
 0x239   :  { %1205 = vpow2.f32 %v571_v16 }
 0x23a   :  { %1207 = vpow2.f32 %v573_v17 }
 0x23b   :  { %1209 = vpow2.f32 %v575_v18  ;;  %v742_v16 = vpop.permute.xlu0 %741 }
 0x240   :  { %v1200_v19 = vpop.eup %1199 }
 0x241   :  { %v1202_v20 = vpop.eup %1201  ;;  %v577_v21 = vsel %vm536_vm7, %v1200_v19, 0.0 }
 0x242   :  { %v1204_v22 = vpop.eup %1203  ;;  %v578_v23 = vsel %vm536_vm7, %v1202_v20, 0.0 }
 0x243   :  { %v1206_v24 = vpop.eup %1205  ;;  %v579_v25 = vadd.f32 %v578_v23, %v577_v21  ;;  %v580_v27 = vsel %vm536_vm7, %v1204_v22, 0.0 }
 0x244   :  { %v1208_v26 = vpop.eup %1207  ;;  %v588_v28 = vsel %vm536_vm7, %v1206_v24, 0.0 }
 0x245   :  { %v1210_v29 = vpop.eup %1209  ;;  %v581_v30 = vadd.f32 %v580_v27, %v579_v25  ;;  %v589_v31 = vsel %vm536_vm7, %v1208_v26, 0.0 }
 0x246   :  { %v590_v32 = vadd.f32 %v589_v31, %v588_v28  ;;  %v591_v34 = vsel %vm536_vm7, %v1210_v29, 0.0 }
 0x247   :  { %v582_v33 = vrot.slane %v581_v30, 4 }
 0x248   :  { %v592_v35 = vadd.f32 %v591_v34, %v590_v32 }
 0x249   :  { %v583_v36 = vadd.f32 %v582_v33, %v581_v30 }
 0x24a   :  { %v593_v37 = vrot.slane %v592_v35, 4 }
 0x24b   :  { %v584_v38 = vrot.slane %v583_v36, 2 }
 0x24c   :  { %v594_v39 = vadd.f32 %v593_v37, %v592_v35 }
 0x24d   :  { %v585_v40 = vadd.f32 %v584_v38, %v583_v36 }
 0x24e   :  { %v595_v41 = vrot.slane %v594_v39, 2 }
 0x24f   :  { %v586_v42 = vrot.slane %v585_v40, 1 }
 0x250   :  { %v596_v43 = vadd.f32 %v595_v41, %v594_v39 }
 0x251   :  { %v587_v44 = vadd.f32 %v586_v42, %v585_v40 }
 0x252   :  { %v597_v45 = vrot.slane %v596_v43, 1 }
 0x253   :  { %1211 = vrcp.f32 %v587_v44 }
 0x254   :  { %v598_v46 = vadd.f32 %v597_v45, %v596_v43  ;;  %v1027_v45 = vld [vmem:[%s1679_s10] ss:$0 sm:$0xff]  ;;  %s1303_s10 = scalar_lea.vmem %s987_s22, 32 }
 0x255   :  { %p1304_p4 = scmp.ne.s32.totalorder %s987_s22, %s1303_s10  ;;  %p1309_p6 = scmp.lt.s32.totalorder %s1303_s10, %s1303_s10 }
 0x256   :  { %1213 = vrcp.f32 %v598_v46 }
 0x257   :  { %p1310_p7 = por %p1309_p6, %p1308_p5 }
 0x259   :  { %p1311_p8 = pnand %p1310_p7, %p1304_p4 }
 0x25d   :  { %v1212_v47 = vpop.eup %1211 }
 0x25e   :  { %v600_v48 = vmul.f32 %v1212_v47, %v1200_v19  ;;  %v601_v49 = vmul.f32 %v1212_v47, %v1202_v20  ;;  %v602_v50 = vmul.f32 %v1212_v47, %v1204_v22  ;;  %v748_v22 = vpop.permute.xlu1 %747 }
 0x260   :  { %v1214_v51 = vpop.eup %1213  ;;  %607 = vst.msk [vmem:[%s1683_s14] sm:$0xff] %vm536_vm7, %v600_v48  ;;  %1120 = vmatprep.mubr.msk.f32.mxu0 %vm536_vm7, %v600_v48  ;;  %608 = vst.msk [vmem:[%s1683_s14 + $0x8] sm:$0xff] %vm536_vm7, %v601_v49 }
 0x261   :  { %609 = vst.msk [vmem:[%s1683_s14 + $0x10] sm:$0xff] %vm536_vm7, %v602_v50  ;;  %1121 = vmatmul.mubr.msk.f32.vlgmr.msra.gmra.mrb[6].mxu0 %vm536_vm7, %v601_v49  ;;  %v604_v52 = vmul.f32 %v1214_v51, %v1206_v24  ;;  %v605_v53 = vmul.f32 %v1214_v51, %v1208_v26  ;;  %v606_v54 = vmul.f32 %v1214_v51, %v1210_v29  ;;  %v1029_v49 = vld [vmem:[%s1681_s12] ss:$0 sm:$0xff] }
 0x262   :  { %1123 = vmatprep.mubr.msk.f32.mxu0 %vm536_vm7, %v602_v50  ;;  %1181 = vmatpush3.bf16.msra.mxu0 %v1180_v63 }
 0x263   :  { %610 = vst.msk [vmem:[%s1683_s14 + $0x18] sm:$0xff] %vm536_vm7, %v604_v52  ;;  %611 = vst.msk [vmem:[%s1683_s14 + $0x20] sm:$0xff] %vm536_vm7, %v605_v53  ;;  %1182 = vmatprep.subr.bf16.mxu0 %v1339_v0 }
 0x264   :  { %612 = vst.msk [vmem:[%s1683_s14 + $0x28] sm:$0xff] %vm536_vm7, %v606_v54 }
 0x265   :  { %1124 = vmatmul.mubr.msk.f32.gmra.mrb[8].mxu0 %vm536_vm7, %v604_v52 }
 0x266   :  { %1126 = vmatprep.mubr.msk.f32.mxu0 %vm536_vm7, %v605_v53 }
 0x269   :  { %1127 = vmatmul.mubr.msk.f32.gmra.mrb[10].mxu0 %vm536_vm7, %v606_v54 }
 0x26a   :  { %1148 = vmatprep.mubr.msk.f32.mxu0 %vm1341_vm1, %v1340_v1  ;;  %v871_v1 = vld [vmem:[%s1680_s11 + $0x10] sm:$0xff] }
 0x26b   :  { %v1183_v3 = vpack.c.bf16 %v872_v2, %v871_v1 }
 0x26d   :  { %1184 = vmatpush3.bf16.msra.mxu0 %v1183_v3 }
 0x334   :  { %v1122_v8 = vpop.f32.mrb[6].mxu0 }
 0x335   :  { %v756_v9 = vmul.f32 %v1122_v8, %v740_v4  ;;  %v702_v10 = vpop.f32.mrb[7].mxu0 }
 0x336   :  { %v755_v11 = vmul.f32 %v738_v6, %v702_v10 }
 0x337   :  { %v762_v13 = vsel %vm102_vm2, %v756_v9, 0.0 }
 0x338   :  { %v761_v14 = vsel %vm102_vm2, %v755_v11, 0.0  ;;  %v1125_v15 = vpop.f32.mrb[8].mxu0 }
 0x339   :  { %v763_v17 = vadd.f32 %v762_v13, %v761_v14  ;;  %v712_v18 = vpop.f32.mrb[9].mxu0  ;;  %v758_v20 = vmul.f32 %v1125_v15, %v744_v5 }
 0x33a   :  { %v757_v19 = vmul.f32 %v742_v16, %v712_v18 }
 0x33b   :  { %v772_v28 = vsel %vm102_vm2, %v758_v20, 0.0 }
 0x33c   :  { %v764_v0 = vsel %vm102_vm2, %v757_v19, 0.0  ;;  %v1128_v21 = vpop.f32.mrb[10].mxu0 }
 0x33d   :  { %v765_v23 = vadd.f32 %v764_v0, %v763_v17  ;;  %v722_v24 = vpop.f32.mrb[11].mxu0  ;;  %v760_v25 = vmul.f32 %v1128_v21, %v748_v22 }
 0x33e   :  { %v759_v26 = vmul.f32 %v746_v12, %v722_v24 }
 0x33f   :  { %v766_v27 = vrot.slane %v765_v23, 4  ;;  %v775_v32 = vsel %vm102_vm2, %v760_v25, 0.0 }
 0x340   :  { %v773_v29 = vsel %vm102_vm2, %v759_v26, 0.0 }
 0x341   :  { %v767_v30 = vadd.f32 %v766_v27, %v765_v23  ;;  %v774_v31 = vadd.f32 %v773_v29, %v772_v28 }
 0x343   :  { %v768_v33 = vrot.slane %v767_v30, 2  ;;  %v776_v34 = vadd.f32 %v775_v32, %v774_v31 }
 0x345   :  { %v777_v35 = vrot.slane %v776_v34, 4  ;;  %v769_v36 = vadd.f32 %v768_v33, %v767_v30 }
 0x347   :  { %v778_v37 = vadd.f32 %v777_v35, %v776_v34  ;;  %v770_v39 = vrot.slane %v769_v36, 1 }
 0x349   :  { %v779_v38 = vrot.slane %v778_v37, 2  ;;  %v771_v42 = vadd.f32 %v770_v39, %v769_v36 }
 0x34b   :  { %v780_v40 = vadd.f32 %v779_v38, %v778_v37 }
 0x34d   :  { %v781_v41 = vrot.slane %v780_v40, 1 }
 0x34f   :  { %v782_v43 = vadd.f32 %v781_v41, %v780_v40 }
 0x351   :  { %v796_v44 = vsel %vm292_vm4, %v782_v43, %v771_v42 }
 0x352   :  { %1138 = vmatmul.mubr.msk.f32.vlgmr.msra.gmra.mrb[8].mxu1 %vm102_vm2, %v796_v44 }
 0x425   :  { %v865_v46 = vpop.f32.mrb[8].mxu1 }
 0x426   :  { %v866_v47 = vadd.f32 %v1027_v45, %v865_v46  ;;  %v1139_v48 = vpop.f32.mrb[9].mxu1 }
 0x428   :  { %1149 = vmatmul.mubr.msk.f32.vlgmr.msra.gmra.mrb[12].mxu0 %vm102_vm2, %v866_v47 }
 0x4fb   :  { %v949_v50 = vpop.f32.mrb[12].mxu0 }
 0x4fc   :  { %v950_v51 = vadd.f32 %v1029_v49, %v949_v50  ;;  %v1150_v52 = vpop.f32.mrb[13].mxu0 }
 0x4fe   :  { %v960_v53 = vrot.slane %v950_v51, %v1567_v7 }
 0x500   :  { %v961_v54 = vcombine.high %v960_v53, %v960_v53  ;;  %v968_v55 = vrot.slane %v960_v53, %v1567_v7 }
 0x502   :  { %v975_v56 = vrot.slane %v961_v54, %v1567_v7  ;;  %979 = vst.msk [vmem:[#allocation11] sm:$0x1] %vm978_vm8, %v968_v55 }
 0x504   :  { %980 = vst.msk [vmem:[#allocation11 + $0x1] sm:$0x1] %vm978_vm8, %v975_v56 }
 0x505   :  { %1314 = shalt.err (!%p1311_p8)
}
 0x506   :  { %s1315_s7 = scalar_lea.hbm %s1682_s13, 32 }
 0x507   :  { %p1316_p9 = scmp.ne.s32.totalorder %s1682_s13, %s1315_s7  ;;  %p1319_p10 = scmp.lt.u32.totalorder %s1315_s7, %s1682_s13 }
 0x509   :  { %p1321_p11 = pnand %p1319_p10, %p1316_p9 }
 0x50b   :  { %1324 = shalt.err (!%p1321_p11)
}
 0x50c   :  { %s1345_s29 = smov 16   ;;  %s1346_s15 = smov 1  }
 0x50d   :  { %992 = dma.vmem_to_hbm [thread:$0]  %s987_s22, 32, %s1682_s13, [#allocation5], %s1345_s29, %s1345_s29, %s1346_s15  }
 0x50e   :  { %1331 = dma.done.wait [#allocation5], 32  }
 0x50f   :  { %1332 = vsyncadd [#allocation5], 4294967264 }
 0x510   :  { %1000 = vsyncpa [#allocation4], 1 }
 0x511   :  { %1001 = vsyncpa [#allocation7], 1 }
 0x512   :  { %1002 = vsyncpa [#allocation10], 1 }
 0x513   :  { %1003 = vsyncpa [#allocation5], 1 }

</bundles_post_ra>
